<compile_context>
chip_gen: v7x
topology: tpu7x:2x2x1
jax: 0.10.0
libtpu: 0.0.40
codegen_flags: <defaults>
</compile_context>

<pallas_src>
import functools

import jax
import jax.numpy as jnp
from jax import lax
from jax.experimental import pallas as pl
from jax.experimental.pallas import tpu as pltpu

NUM_CLASSES = 12          # stand-in for len(source_classes)
STEM_CH     = 64          # ResNet50 stem output channels
FEAT_DIM    = STEM_CH     # TODO(synk): real ResNet50Fc.output_num() == 2048 (ResNet layers1-4 omitted)
BOTTLENECK  = 256
IN_CH       = 3           # RGB input, as expected by ResNet50

K_RAW    = 7 * 7 * IN_CH  # 147 im2col K
K_PAD    = 256            # lane-friendly padded K
COUT_PAD = 128            # lane-dense conv output channels (64 real + 64 zero)
NCLS_PAD = 128            # lane-dense class dim (12 real + -inf padding)


def _round_up(x, m):
    return ((x + m - 1) // m) * m


# ------------------ fused conv(+folded BN + ReLU) + global-average-pool ------------------

def _conv_gap_kernel(p_ref, w_ref, b_ref, o_ref, acc_ref, *, p_valid, tile_p):
    s = pl.program_id(1)

    @pl.when(s == 0)
    def _():
        acc_ref[...] = jnp.zeros_like(acc_ref)

    # bf16 x bf16 -> f32 on the MXU
    x = jnp.dot(p_ref[...], w_ref[...], preferred_element_type=jnp.float32)
    x = jnp.maximum(x + b_ref[...], 0.0)                    # folded BN bias + ReLU
    # mask zero-padded spatial rows (global row index >= valid OH*OW)
    row = s * tile_p + lax.broadcasted_iota(jnp.int32, (tile_p, 1), 0)
    x = jnp.where(row < p_valid, x, 0.0)
    acc_ref[...] += jnp.sum(x, axis=0, keepdims=True)       # per-image partial GAP sum

    @pl.when(s == pl.num_programs(1) - 1)
    def _():
        o_ref[...] = (acc_ref[...] * (1.0 / p_valid)).astype(o_ref.dtype)


def conv_bn_relu_gap(patches, w_mat, b_row, *, p_valid, tile_p):
    n, p_pad, k_pad = patches.shape
    cout = w_mat.shape[1]
    grid = (n, p_pad // tile_p)

    flops = 2 * n * p_pad * k_pad * cout
    bytes_accessed = (patches.size * patches.dtype.itemsize
                      + w_mat.size * w_mat.dtype.itemsize
                      + b_row.size * 4 + n * cout * 4)

    kernel = functools.partial(_conv_gap_kernel, p_valid=p_valid, tile_p=tile_p)
    out = pl.pallas_call(
        kernel,
        out_shape=jax.ShapeDtypeStruct((n, 1, cout), jnp.float32),
        grid=grid,
        in_specs=[
            pl.BlockSpec((None, tile_p, k_pad), lambda i, s: (i, s, 0)),  # patches tile
            pl.BlockSpec((k_pad, cout), lambda i, s: (0, 0)),             # weights (resident)
            pl.BlockSpec((1, cout), lambda i, s: (0, 0)),                 # folded BN bias
        ],
        out_specs=pl.BlockSpec((None, 1, cout), lambda i, s: (i, 0, 0)),  # pooled feature row
        scratch_shapes=[pltpu.VMEM((1, cout), jnp.float32)],              # GAP accumulator
        compiler_params=pltpu.CompilerParams(
            dimension_semantics=("parallel", "arbitrary"),
            vmem_limit_bytes=32 * 1024 * 1024),
        cost_estimate=pl.CostEstimate(flops=flops, transcendentals=0,
                                      bytes_accessed=bytes_accessed),
    )(patches, w_mat, b_row)
    return out.reshape(n, cout)


# ---------------------------- CLS head (fused, tiny) ----------------------------

def _cls_kernel(f_ref, w1_ref, b1_ref, w2_ref, b2_ref, y_ref):
    h = jnp.dot(f_ref[...], w1_ref[...], preferred_element_type=jnp.float32) + b1_ref[...]
    logits = jnp.dot(h, w2_ref[...], preferred_element_type=jnp.float32) + b2_ref[...]
    m = jnp.max(logits, axis=-1, keepdims=True)
    e = jnp.exp(logits - m)
    denom = jnp.sum(e, axis=-1, keepdims=True)
    y_ref[...] = e * pl.reciprocal(denom, approx=True)


def _vmem_full():
    return pl.BlockSpec(memory_space=pltpu.MemorySpace.VMEM)


def cls_head(f, w1, b1, w2, b2):
    n = f.shape[0]
    return pl.pallas_call(
        _cls_kernel,
        out_shape=jax.ShapeDtypeStruct((n, NCLS_PAD), jnp.float32),
        in_specs=[_vmem_full()] * 5,
        out_specs=_vmem_full(),
    )(f, w1, b1, w2, b2)


# ---------------------------- glue (plain JAX) ----------------------------

def im2col(x_nhwc, kh, kw, stride, pad):
    # TODO(synk): im2col still expands patches off-chip in HBM; moving the 7x7/s2
    # window expansion on-chip (halo DMA + strided slices) is the remaining HBM win.
    x = jnp.pad(x_nhwc, ((0, 0), (pad, pad), (pad, pad), (0, 0)))
    n, h, w, c = x.shape
    oh = (h - kh) // stride + 1
    ow = (w - kw) // stride + 1
    cols = []
    for i in range(kh):
        for j in range(kw):
            cols.append(x[:, i:i + (oh - 1) * stride + 1:stride,
                             j:j + (ow - 1) * stride + 1:stride, :])
    p = jnp.stack(cols, axis=3)                       # [N, OH, OW, KH*KW, C]
    return p.reshape(n, oh * ow, kh * kw * c), oh, ow


def init_params(key):
    k1, k2, k3 = jax.random.split(key, 3)
    # stem conv, PyTorch weight layout [Cout, Cin, KH, KW], no bias (ResNet)
    conv_w = jax.random.normal(k1, (STEM_CH, IN_CH, 7, 7), jnp.float32) * 0.05
    # BatchNorm (inference mode) parameters, folded into the conv
    gamma = jnp.ones((STEM_CH,), jnp.float32)
    beta  = jnp.zeros((STEM_CH,), jnp.float32)
    rmean = jnp.zeros((STEM_CH,), jnp.float32)
    rvar  = jnp.ones((STEM_CH,), jnp.float32)
    eps   = 1e-5
    scale = gamma / jnp.sqrt(rvar + eps)
    conv_w_folded = conv_w * scale[:, None, None, None]
    conv_b_folded = beta - rmean * scale
    # [Cout,Cin,KH,KW] -> [KH,KW,Cin,Cout] -> [KH*KW*Cin, Cout] (matches im2col ordering)
    w_mat = jnp.transpose(conv_w_folded, (2, 3, 1, 0)).reshape(K_RAW, STEM_CH)
    # pad K 147->256 and Cout 64->128 with zeros; bf16 for the MXU
    w_pad = jnp.zeros((K_PAD, COUT_PAD), jnp.float32).at[:K_RAW, :STEM_CH].set(w_mat)
    b_pad = jnp.zeros((1, COUT_PAD), jnp.float32).at[:, :STEM_CH].set(conv_b_folded[None, :])

    # CLS head: Linear(FEAT_DIM, 256) -> Linear(256, NUM_CLASSES) -> Softmax
    w1 = jax.random.normal(k2, (FEAT_DIM, BOTTLENECK), jnp.float32) * 0.05
    b1 = jnp.zeros((1, BOTTLENECK), jnp.float32)
    w2 = jax.random.normal(k3, (BOTTLENECK, NUM_CLASSES), jnp.float32) * 0.05
    b2 = jnp.zeros((1, NUM_CLASSES), jnp.float32)
    # pad head: w1 rows FEAT_DIM->COUT_PAD (padded feature cols are zero), class cols
    # NUM_CLASSES->NCLS_PAD with -1e30 bias so padded softmax probabilities are exactly 0.
    w1_pad = jnp.zeros((COUT_PAD, BOTTLENECK), jnp.float32).at[:FEAT_DIM, :].set(w1)
    w2_pad = jnp.zeros((BOTTLENECK, NCLS_PAD), jnp.float32).at[:, :NUM_CLASSES].set(w2)
    b2_pad = jnp.full((1, NCLS_PAD), -1e30, jnp.float32).at[:, :NUM_CLASSES].set(b2)

    return dict(conv_w=w_pad.astype(jnp.bfloat16), conv_b=b_pad,
                w1=w1_pad, b1=b1, w2=w2_pad, b2=b2_pad)


def cla_network_forward(params, x_nchw):
    x = jnp.transpose(x_nchw, (0, 2, 3, 1)).astype(jnp.float32)   # NCHW -> NHWC
    patches, oh, ow = im2col(x, 7, 7, stride=2, pad=3)            # [N, P, 147]
    n, p, _ = patches.shape
    tile_p = min(512, _round_up(p, 8))
    p_pad = _round_up(p, tile_p)
    patches_pad = jnp.zeros((n, p_pad, K_PAD), jnp.bfloat16)
    patches_pad = patches_pad.at[:, :p, :K_RAW].set(patches.astype(jnp.bfloat16))

    # fused conv + BN + ReLU + global-average-pool -> [N, COUT_PAD]
    # TODO(synk): ResNet50 maxpool + layer1..layer4 omitted; GAP applied to stem features.
    f = conv_bn_relu_gap(patches_pad, params["conv_w"], params["conv_b"],
                         p_valid=p, tile_p=tile_p)

    y_pad = cls_head(f, params["w1"], params["b1"], params["w2"], params["b2"])
    return y_pad[:, :NUM_CLASSES]                                 # softmax probabilities y


if __name__ == "__main__":
    key = jax.random.PRNGKey(0)
    pkey, xkey = jax.random.split(key)
    params = init_params(pkey)
    x = jax.random.normal(xkey, (2, IN_CH, 16, 16), jnp.float32)  # NCHW, like PyTorch input

    y = jax.jit(cla_network_forward)(params, x)
    y = jax.block_until_ready(y)

    assert y.shape == (2, NUM_CLASSES)
    assert bool(jnp.all(jnp.isfinite(y)))
    row_sums = jnp.sum(y, axis=-1)
    assert bool(jnp.all(jnp.abs(row_sums - 1.0) < 1e-2))
    print("KERNEL_OK")
</pallas_src>

<mosaic_0001>
module attributes {stable_mosaic.version = 11 : i64} {
  func.func @_conv_gap_kernel(%arg0: i32, %arg1: i32, %arg2: memref<1x64x256xbf16, #tpu.memory_space<vmem>>, %arg3: memref<256x128xbf16, #tpu.memory_space<vmem>>, %arg4: memref<1x128xf32, #tpu.memory_space<vmem>>, %arg5: memref<1x1x128xf32, #tpu.memory_space<vmem>>, %arg6: memref<1x128xf32, #tpu.memory_space<vmem>>) attributes {dimension_semantics = [#tpu.dimension_semantics<parallel>, #tpu.dimension_semantics<arbitrary>], iteration_bounds = array<i64: 2, 1>, scalar_prefetch = 0 : i64, scratch_operands = 1 : i64, tpu.core_type = #tpu.core_type<tc>, window_params = [{transform_indices = @transform_0, window_bounds = array<i64: 1, 64, 256>}, {pipeline_mode = #tpu.pipeline_mode<synchronous>, transform_indices = @transform_1, window_bounds = array<i64: 256, 128>}, {pipeline_mode = #tpu.pipeline_mode<synchronous>, transform_indices = @transform_2, window_bounds = array<i64: 1, 128>}, {transform_indices = @transform_3, window_bounds = array<i64: 1, 1, 128>}]} {
    %c0_i32 = arith.constant 0 : i32
    %0 = arith.cmpi eq, %arg1, %c0_i32 : i32
    %1 = arith.extui %0 : i1 to i32
    %c0_i32_0 = arith.constant 0 : i32
    %2 = arith.cmpi ne, %1, %c0_i32_0 : i32
    scf.if %2 {
      %cst_17 = arith.constant 0.000000e+00 : f32
      %30 = vector.broadcast %cst_17 : f32 to vector<1x128xf32>
      %c0_18 = arith.constant 0 : index
      %c0_19 = arith.constant 0 : index
      %31 = vector.load %arg6[%c0_18, %c0_19] : memref<1x128xf32, #tpu.memory_space<vmem>>, vector<1x128xf32>
      tpu.vector_store %arg6[%c0_18, %c0_19], %30 {strides = array<i32>} : memref<1x128xf32, #tpu.memory_space<vmem>>, vector<1x128xf32>,
    } else {
    }
    %c0 = arith.constant 0 : index
    %c0_1 = arith.constant 0 : index
    %c0_2 = arith.constant 0 : index
    %3 = vector.load %arg2[%c0, %c0_1, %c0_2] : memref<1x64x256xbf16, #tpu.memory_space<vmem>>, vector<1x64x256xbf16>
    %4 = vector.shape_cast %3 : vector<1x64x256xbf16> to vector<64x256xbf16>
    %c0_3 = arith.constant 0 : index
    %c0_4 = arith.constant 0 : index
    %5 = vector.load %arg3[%c0_3, %c0_4] : memref<256x128xbf16, #tpu.memory_space<vmem>>, vector<256x128xbf16>
    %cst = arith.constant dense<0.000000e+00> : vector<64x128xf32>
    %6 = tpu.matmul %4, %5, %cst {dimension_numbers = #tpu.dot_dimension_numbers<[1], [0], [0], [1], [0, 0, 1, 1], [], []>} : vector<64x256xbf16>, vector<256x128xbf16>, vector<64x128xf32> -> vector<64x128xf32>
    %c0_5 = arith.constant 0 : index
    %c0_6 = arith.constant 0 : index
    %7 = vector.load %arg4[%c0_5, %c0_6] : memref<1x128xf32, #tpu.memory_space<vmem>>, vector<1x128xf32>
    %8 = vector.broadcast %7 : vector<1x128xf32> to vector<64x128xf32>
    %9 = arith.addf %6, %8 : vector<64x128xf32>
    %cst_7 = arith.constant 0.000000e+00 : f32
    %10 = vector.broadcast %cst_7 : f32 to vector<64x128xf32>
    %11 = arith.maximumf %9, %10 : vector<64x128xf32>
    %c64_i32 = arith.constant 64 : i32
    %12 = arith.muli %arg1, %c64_i32 : i32
    %13 = tpu.iota {dimensions = array<i32: 0>} : vector<64x1xi32>
    %14 = vector.broadcast %12 : i32 to vector<64x1xi32>
    %15 = arith.addi %14, %13 : vector<64x1xi32>
    %c64_i32_8 = arith.constant 64 : i32
    %16 = vector.broadcast %c64_i32_8 : i32 to vector<64x1xi32>
    %17 = arith.cmpi slt, %15, %16 : vector<64x1xi32>
    %cst_9 = arith.constant 0.000000e+00 : f32
    %18 = vector.shape_cast %17 : vector<64x1xi1> to vector<64x1xi1>
    %19 = vector.broadcast %18 : vector<64x1xi1> to vector<64x128xi1>
    %20 = vector.broadcast %cst_9 : f32 to vector<64x128xf32>
    %21 = arith.select %19, %11, %20 : vector<64x128xi1>, vector<64x128xf32>
    %c0_10 = arith.constant 0 : index
    %c0_11 = arith.constant 0 : index
    %22 = vector.load %arg6[%c0_10, %c0_11] : memref<1x128xf32, #tpu.memory_space<vmem>>, vector<1x128xf32>
    %cst_12 = arith.constant dense<0.000000e+00> : vector<128xf32>
    %23 = vector.multi_reduction <add>, %21, %cst_12 [0] : vector<64x128xf32> to vector<128xf32>
    %24 = vector.shape_cast %23 : vector<128xf32> to vector<1x128xf32>
    %25 = arith.addf %22, %24 : vector<1x128xf32>
    %c0_13 = arith.constant 0 : index
    %c0_14 = arith.constant 0 : index
    %26 = vector.load %arg6[%c0_13, %c0_14] : memref<1x128xf32, #tpu.memory_space<vmem>>, vector<1x128xf32>
    tpu.vector_store %arg6[%c0_13, %c0_14], %25 {strides = array<i32>} : memref<1x128xf32, #tpu.memory_space<vmem>>, vector<1x128xf32>,
    %c0_i32_15 = arith.constant 0 : i32
    %27 = arith.cmpi eq, %arg1, %c0_i32_15 : i32
    %28 = arith.extui %27 : i1 to i32
    %c0_i32_16 = arith.constant 0 : i32
    %29 = arith.cmpi ne, %28, %c0_i32_16 : i32
    scf.if %29 {
      %c0_17 = arith.constant 0 : index
      %c0_18 = arith.constant 0 : index
      %30 = vector.load %arg6[%c0_17, %c0_18] : memref<1x128xf32, #tpu.memory_space<vmem>>, vector<1x128xf32>
      %cst_19 = arith.constant 1.562500e-02 : f32
      %31 = vector.broadcast %cst_19 : f32 to vector<1x128xf32>
      %32 = arith.mulf %30, %31 : vector<1x128xf32>
      %c0_20 = arith.constant 0 : index
      %c0_21 = arith.constant 0 : index
      %c0_22 = arith.constant 0 : index
      %33 = vector.load %arg5[%c0_20, %c0_21, %c0_22] : memref<1x1x128xf32, #tpu.memory_space<vmem>>, vector<1x1x128xf32>
      %34 = vector.shape_cast %33 : vector<1x1x128xf32> to vector<1x128xf32>
      %35 = vector.shape_cast %32 : vector<1x128xf32> to vector<1x1x128xf32>
      tpu.vector_store %arg5[%c0_20, %c0_21, %c0_22], %35 {strides = array<i32>} : memref<1x1x128xf32, #tpu.memory_space<vmem>>, vector<1x1x128xf32>,
    } else {
    }
    return
  }
  func.func @transform_0(%arg0: i32, %arg1: i32) -> (i32, i32, i32) {
    %c0_i32 = arith.constant 0 : i32
    %c0_i32_0 = arith.constant 0 : i32
    return %arg0, %arg1, %c0_i32 : i32, i32, i32
  }
  func.func @transform_1(%arg0: i32, %arg1: i32) -> (i32, i32) {
    %c0_i32 = arith.constant 0 : i32
    %c0_i32_0 = arith.constant 0 : i32
    %c0_i32_1 = arith.constant 0 : i32
    return %c0_i32, %c0_i32_0 : i32, i32
  }
  func.func @transform_2(%arg0: i32, %arg1: i32) -> (i32, i32) {
    %c0_i32 = arith.constant 0 : i32
    %c0_i32_0 = arith.constant 0 : i32
    %c0_i32_1 = arith.constant 0 : i32
    return %c0_i32, %c0_i32_0 : i32, i32
  }
  func.func @transform_3(%arg0: i32, %arg1: i32) -> (i32, i32, i32) {
    %c0_i32 = arith.constant 0 : i32
    %c0_i32_0 = arith.constant 0 : i32
    %c0_i32_1 = arith.constant 0 : i32
    return %arg0, %c0_i32, %c0_i32_0 : i32, i32, i32
  }
}

module attributes {stable_mosaic.version = 11 : i64} {
  func.func @_cls_kernel(%arg0: memref<2x128xf32, #tpu.memory_space<vmem>>, %arg1: memref<128x256xf32, #tpu.memory_space<vmem>>, %arg2: memref<1x256xf32, #tpu.memory_space<vmem>>, %arg3: memref<256x128xf32, #tpu.memory_space<vmem>>, %arg4: memref<1x128xf32, #tpu.memory_space<vmem>>, %arg5: memref<2x128xf32, #tpu.memory_space<vmem>>) attributes {dimension_semantics = [], scalar_prefetch = 0 : i64, scratch_operands = 0 : i64, tpu.core_type = #tpu.core_type<tc>} {
    %c0 = arith.constant 0 : index
    %c0_0 = arith.constant 0 : index
    %0 = vector.load %arg0[%c0, %c0_0] : memref<2x128xf32, #tpu.memory_space<vmem>>, vector<2x128xf32>
    %c0_1 = arith.constant 0 : index
    %c0_2 = arith.constant 0 : index
    %1 = vector.load %arg1[%c0_1, %c0_2] : memref<128x256xf32, #tpu.memory_space<vmem>>, vector<128x256xf32>
    %cst = arith.constant dense<0.000000e+00> : vector<2x256xf32>
    %2 = tpu.matmul %0, %1, %cst {dimension_numbers = #tpu.dot_dimension_numbers<[1], [0], [0], [1], [0, 0, 1, 1], [], []>} : vector<2x128xf32>, vector<128x256xf32>, vector<2x256xf32> -> vector<2x256xf32>
    %c0_3 = arith.constant 0 : index
    %c0_4 = arith.constant 0 : index
    %3 = vector.load %arg2[%c0_3, %c0_4] : memref<1x256xf32, #tpu.memory_space<vmem>>, vector<1x256xf32>
    %4 = vector.broadcast %3 : vector<1x256xf32> to vector<2x256xf32>
    %5 = arith.addf %2, %4 : vector<2x256xf32>
    %c0_5 = arith.constant 0 : index
    %c0_6 = arith.constant 0 : index
    %6 = vector.load %arg3[%c0_5, %c0_6] : memref<256x128xf32, #tpu.memory_space<vmem>>, vector<256x128xf32>
    %cst_7 = arith.constant dense<0.000000e+00> : vector<2x128xf32>
    %7 = tpu.matmul %5, %6, %cst_7 {dimension_numbers = #tpu.dot_dimension_numbers<[1], [0], [0], [1], [0, 0, 1, 1], [], []>} : vector<2x256xf32>, vector<256x128xf32>, vector<2x128xf32> -> vector<2x128xf32>
    %c0_8 = arith.constant 0 : index
    %c0_9 = arith.constant 0 : index
    %8 = vector.load %arg4[%c0_8, %c0_9] : memref<1x128xf32, #tpu.memory_space<vmem>>, vector<1x128xf32>
    %9 = vector.broadcast %8 : vector<1x128xf32> to vector<2x128xf32>
    %10 = arith.addf %7, %9 : vector<2x128xf32>
    %cst_10 = arith.constant dense<0xFF800000> : vector<2xf32>
    %11 = vector.multi_reduction <maximumf>, %10, %cst_10 [1] : vector<2x128xf32> to vector<2xf32>
    %12 = vector.shape_cast %11 : vector<2xf32> to vector<2x1xf32>
    %13 = vector.broadcast %12 : vector<2x1xf32> to vector<2x128xf32>
    %14 = arith.subf %10, %13 : vector<2x128xf32>
    %15 = math.exp %14 : vector<2x128xf32>
    %cst_11 = arith.constant dense<0.000000e+00> : vector<2xf32>
    %16 = vector.multi_reduction <add>, %15, %cst_11 [1] : vector<2x128xf32> to vector<2xf32>
    %17 = vector.shape_cast %16 : vector<2xf32> to vector<2x1xf32>
    %18 = tpu.reciprocal %17 {approx = true} : vector<2x1xf32> -> vector<2x1xf32>
    %19 = vector.broadcast %18 : vector<2x1xf32> to vector<2x128xf32>
    %20 = arith.mulf %15, %19 : vector<2x128xf32>
    %c0_12 = arith.constant 0 : index
    %c0_13 = arith.constant 0 : index
    %21 = vector.load %arg5[%c0_12, %c0_13] : memref<2x128xf32, #tpu.memory_space<vmem>>, vector<2x128xf32>
    tpu.vector_store %arg5[%c0_12, %c0_13], %20 {strides = array<i32>} : memref<2x128xf32, #tpu.memory_space<vmem>>, vector<2x128xf32>,
    return
  }
}

</mosaic_0001>

<bundles_post_ra>
// kernel: cla_network_forward.3
= control target key start
LH: loop header
LB: loop body
LE: loop exit
PB: predicated region body
PF: predicated region fallthrough
CT: control target
= control target key end

     0   :  { %v403_v7 = vmov 0.0   ;;  %s648_s0 = inlined_call_operand.vmem [shape: f32[2,128], index: 0, kind: input, shape index: {}]   ;;  %s649_s1 = inlined_call_operand.vmem [shape: f32[128,256], index: 1, kind: input, shape index: {}]   ;;  %s650_s2 = inlined_call_operand.vmem [shape: f32[1,256], index: 2, kind: input, shape index: {}]   ;;  %s651_s3 = inlined_call_operand.vmem [shape: f32[256,128], index: 3, kind: input, shape index: {}]   ;;  %s652_s4 = inlined_call_operand.vmem [shape: f32[1,128], index: 4, kind: input, shape index: {}]   ;;  %s653_s5 = inlined_call_operand.hbm [shape: f32[2,128], index: 5, kind: output, shape index: {}]  }
   0x1   :  { %v23_v0 = vld [vmem:[%s649_s1 + $0x8] sm:$0xff]  ;;  %v25_v1 = vld [vmem:[%s649_s1 + $0x18] sm:$0xff]  ;;  %v22_v2 = vld [vmem:[%s649_s1] sm:$0xff]  ;;  %130 = vmatprep.mubr.f32.mxu0 %v403_v7 }
   0x2   :  { %v309_v3 = vpack.c.bf16 %v25_v1, %v23_v0  ;;  %v24_v4 = vld [vmem:[%s649_s1 + $0x10] sm:$0xff]  ;;  %v27_v5 = vld [vmem:[%s649_s1 + $0x28] sm:$0xff]  ;;  %v29_v6 = vld [vmem:[%s649_s1 + $0x38] sm:$0xff] }
   0x3   :  { %v311_v8 = vpack.c.bf16 %v24_v4, %v22_v2  ;;  %v313_v9 = vpack.c.bf16 %v29_v6, %v27_v5  ;;  %v26_v10 = vld [vmem:[%s649_s1 + $0x20] sm:$0xff]  ;;  %v28_v11 = vld [vmem:[%s649_s1 + $0x30] sm:$0xff]  ;;  %v31_v12 = vld [vmem:[%s649_s1 + $0x48] sm:$0xff] }
   0x4   :  { %310 = vmatprep.subr.bf16.mxu0 %v309_v3  ;;  %v33_v13 = vld [vmem:[%s649_s1 + $0x58] sm:$0xff]  ;;  %v315_v14 = vpack.c.bf16 %v28_v11, %v26_v10  ;;  %v30_v16 = vld [vmem:[%s649_s1 + $0x40] sm:$0xff]  ;;  %v32_v17 = vld [vmem:[%s649_s1 + $0x50] sm:$0xff] }
   0x5   :  { %312 = vmatpush1.bf16.msra.mxu0 %v311_v8  ;;  %v317_v15 = vpack.c.bf16 %v33_v13, %v31_v12  ;;  %v35_v18 = vld [vmem:[%s649_s1 + $0x68] sm:$0xff]  ;;  %v37_v19 = vld [vmem:[%s649_s1 + $0x78] sm:$0xff]  ;;  %v319_v20 = vpack.c.bf16 %v32_v17, %v30_v16  ;;  %v34_v22 = vld [vmem:[%s649_s1 + $0x60] sm:$0xff] }
   0x6   :  { %314 = vmatprep.subr.bf16.mxu0 %v313_v9  ;;  %v321_v21 = vpack.c.bf16 %v37_v19, %v35_v18  ;;  %v36_v23 = vld [vmem:[%s649_s1 + $0x70] sm:$0xff]  ;;  %v39_v24 = vld [vmem:[%s649_s1 + $0x88] sm:$0xff]  ;;  %v41_v25 = vld [vmem:[%s649_s1 + $0x98] sm:$0xff] }
   0x7   :  { %v38_v26 = vld [vmem:[%s649_s1 + $0x80] sm:$0xff]  ;;  %v40_v27 = vld [vmem:[%s649_s1 + $0x90] sm:$0xff]  ;;  %v154_v29 = vld [vmem:[%s651_s3 + $0x88] sm:$0xff]  ;;  %v323_v31 = vpack.c.bf16 %v36_v23, %v34_v22  ;;  %v325_v36 = vpack.c.bf16 %v41_v25, %v39_v24 }
   0x8   :  { %v153_v28 = vld [vmem:[%s651_s3 + $0x80] sm:$0xff]  ;;  %v138_v33 = vld [vmem:[%s651_s3 + $0x8] sm:$0xff]  ;;  %v155_v34 = vld [vmem:[%s651_s3 + $0x90] sm:$0xff]  ;;  %v327_v46 = vpack.c.bf16 %v40_v27, %v38_v26 }
   0x9   :  { %316 = vmatpush1.bf16.msra.mxu0 %v315_v14  ;;  %v137_v30 = vld [vmem:[%s651_s3] sm:$0xff]  ;;  %v341_v32 = vpack.c.bf16 %v154_v29, %v153_v28  ;;  %v156_v35 = vld [vmem:[%s651_s3 + $0x98] sm:$0xff]  ;;  %v139_v39 = vld [vmem:[%s651_s3 + $0x10] sm:$0xff] }
   0xa   :  { %318 = vmatprep.subr.bf16.mxu0 %v317_v15  ;;  %v343_v37 = vpack.c.bf16 %v138_v33, %v137_v30  ;;  %v345_v38 = vpack.c.bf16 %v156_v35, %v155_v34  ;;  %v140_v40 = vld [vmem:[%s651_s3 + $0x18] sm:$0xff]  ;;  %v157_v41 = vld [vmem:[%s651_s3 + $0xa0] sm:$0xff]  ;;  %v43_v42 = vld [vmem:[%s649_s1 + $0xa8] sm:$0xff] }
   0xb   :  { %v45_v43 = vld [vmem:[%s649_s1 + $0xb8] sm:$0xff]  ;;  %342 = vmatprep.subr.bf16.mxu1 %v341_v32  ;;  %v158_v44 = vld [vmem:[%s651_s3 + $0xa8] sm:$0xff]  ;;  %v347_v45 = vpack.c.bf16 %v140_v40, %v139_v39  ;;  %v42_v47 = vld [vmem:[%s649_s1 + $0xa0] sm:$0xff] }
   0xc   :  { %344 = vmatpush3.bf16.msra.mxu1 %v343_v37  ;;  %v349_v48 = vpack.c.bf16 %v158_v44, %v157_v41  ;;  %v141_v49 = vld [vmem:[%s651_s3 + $0x20] sm:$0xff]  ;;  %v142_v50 = vld [vmem:[%s651_s3 + $0x28] sm:$0xff]  ;;  %v329_v51 = vpack.c.bf16 %v45_v43, %v43_v42  ;;  %v44_v52 = vld [vmem:[%s649_s1 + $0xb0] sm:$0xff] }
   0xd   :  { %320 = vmatpush1.bf16.msra.mxu0 %v319_v20  ;;  %346 = vmatprep.subr.bf16.mxu1 %v345_v38  ;;  %v159_v53 = vld [vmem:[%s651_s3 + $0xb0] sm:$0xff]  ;;  %v160_v54 = vld [vmem:[%s651_s3 + $0xb8] sm:$0xff]  ;;  %v47_v55 = vld [vmem:[%s649_s1 + $0xc8] sm:$0xff]  ;;  %v351_v58 = vpack.c.bf16 %v142_v50, %v141_v49  ;;  %v331_v59 = vpack.c.bf16 %v44_v52, %v42_v47 }
   0xe   :  { %322 = vmatprep.subr.bf16.mxu0 %v321_v21  ;;  %v49_v56 = vld [vmem:[%s649_s1 + $0xd8] sm:$0xff]  ;;  %v46_v57 = vld [vmem:[%s649_s1 + $0xc0] sm:$0xff]  ;;  %v353_v60 = vpack.c.bf16 %v160_v54, %v159_v53  ;;  %v143_v61 = vld [vmem:[%s651_s3 + $0x30] sm:$0xff] }
   0xf   :  { %v144_v62 = vld [vmem:[%s651_s3 + $0x38] sm:$0xff] }
  0x10   :  { %348 = vmatpush3.bf16.msra.mxu1 %v347_v45 }
  0x11   :  { %324 = vmatpush1.bf16.msra.mxu0 %v323_v31  ;;  %350 = vmatprep.subr.bf16.mxu1 %v349_v48 }
  0x12   :  { %326 = vmatprep.subr.bf16.mxu0 %v325_v36 }
  0x15   :  { %328 = vmatpush1.bf16.msra.mxu0 %v327_v46 }
  0x16   :  { %10 = vsyncpa [#allocation3], 0  ;;  %330 = vmatprep.subr.bf16.mxu0 %v329_v51  ;;  %v333_v63 = vpack.c.bf16 %v49_v56, %v47_v55  ;;  %v48_v0 = vld [vmem:[%s649_s1 + $0xd0] sm:$0xff]  ;;  %v161_v1 = vld [vmem:[%s651_s3 + $0xc0] sm:$0xff]  ;;  %352 = vmatpush3.bf16.msra.mxu1 %v351_v58  ;;  %v355_v5 = vpack.c.bf16 %v144_v62, %v143_v61  ;;  %v56_v34 = vlaneseq  ;;  %vm246_vm0 = vcmask 1041408  }
  0x17   :  { %v162_v2 = vld [vmem:[%s651_s3 + $0xc8] sm:$0xff]  ;;  %v53_v4 = vld [vmem:[%s649_s1 + $0xf8] sm:$0xff]  ;;  %v335_v6 = vpack.c.bf16 %v48_v0, %v46_v57  ;;  %v50_v7 = vld [vmem:[%s649_s1 + $0xe0] sm:$0xff]  ;;  %354 = vmatprep.subr.bf16.mxu1 %v353_v60 }
  0x18   :  { %v51_v3 = vld [vmem:[%s649_s1 + $0xe8] sm:$0xff]  ;;  %v357_v8 = vpack.c.bf16 %v162_v2, %v161_v1  ;;  %v145_v9 = vld [vmem:[%s651_s3 + $0x40] sm:$0xff]  ;;  %v52_v12 = vld [vmem:[%s649_s1 + $0xf0] sm:$0xff]  ;;  %v57_v35 = vshrl.u32 %v56_v34, 7 }
  0x19   :  { %332 = vmatpush1.bf16.msra.mxu0 %v331_v59  ;;  %v146_v10 = vld [vmem:[%s651_s3 + $0x48] sm:$0xff]  ;;  %v337_v11 = vpack.c.bf16 %v53_v4, %v51_v3  ;;  %v163_v13 = vld [vmem:[%s651_s3 + $0xd0] sm:$0xff]  ;;  %v164_v14 = vld [vmem:[%s651_s3 + $0xd8] sm:$0xff]  ;;  %v339_v16 = vpack.c.bf16 %v52_v12, %v50_v7 }
  0x1a   :  { %334 = vmatprep.subr.bf16.mxu0 %v333_v63  ;;  %356 = vmatpush3.bf16.msra.mxu1 %v355_v5  ;;  %v359_v15 = vpack.c.bf16 %v146_v10, %v145_v9  ;;  %v361_v17 = vpack.c.bf16 %v164_v14, %v163_v13  ;;  %v147_v18 = vld [vmem:[%s651_s3 + $0x50] sm:$0xff]  ;;  %v148_v19 = vld [vmem:[%s651_s3 + $0x58] sm:$0xff]  ;;  %v165_v20 = vld [vmem:[%s651_s3 + $0xe0] sm:$0xff]  ;;  %v62_v36 = vsub.s32 1, %v57_v35  ;;  %v58_v38 = vsub.s32 0, %v57_v35 }
  0x1b   :  { %358 = vmatprep.subr.bf16.mxu1 %v357_v8  ;;  %v166_v21 = vld [vmem:[%s651_s3 + $0xe8] sm:$0xff]  ;;  %v363_v22 = vpack.c.bf16 %v148_v19, %v147_v18  ;;  %v21_v23 = vld [vmem:[%s648_s0] sm:$0x3]  ;;  %v167_v28 = vld [vmem:[%s651_s3 + $0xf0] sm:$0xff] }
  0x1c   :  { %v365_v24 = vpack.c.bf16 %v166_v21, %v165_v20  ;;  %v149_v25 = vld [vmem:[%s651_s3 + $0x60] sm:$0xff]  ;;  %v150_v26 = vld [vmem:[%s651_s3 + $0x68] sm:$0xff]  ;;  %v168_v29 = vld [vmem:[%s651_s3 + $0xf8] sm:$0xff] }
  0x1d   :  { %336 = vmatpush1.bf16.msra.mxu0 %v335_v6  ;;  %v367_v27 = vpack.c.bf16 %v150_v26, %v149_v25  ;;  %v369_v30 = vpack.c.bf16 %v168_v29, %v167_v28  ;;  %v151_v31 = vld [vmem:[%s651_s3 + $0x70] sm:$0xff]  ;;  %v152_v32 = vld [vmem:[%s651_s3 + $0x78] sm:$0xff]  ;;  %v54_v37 = vld [vmem:[%s650_s2] sm:$0x3]  ;;  %s404_s2 = smov [#allocation2]  }
  0x1e   :  { %338 = vmatprep.subr.bf16.mxu0 %v337_v11  ;;  %360 = vmatpush3.bf16.msra.mxu1 %v359_v15  ;;  %v371_v33 = vpack.c.bf16 %v152_v32, %v151_v31  ;;  %v63_v39 = vrot.slane %v54_v37, %v62_v36  ;;  %v59_v40 = vrot.slane %v54_v37, %v58_v38  ;;  %v273_v47 = vld [vmem:[%s652_s4] ss:$0 sm:$0xff]  ;;  %s265_s24 = sshll.u32 %s404_s2, 4  ;;  %s266_s24 = int_to_ptr.vmem [resolvable:$true] %s265_s24 }
  0x1f   :  { %362 = vmatprep.subr.bf16.mxu1 %v361_v17  ;;  %s379_s4 = scalar_lea.vmem %s266_s24, 32  ;;  %p384_p1 = scmp.lt.s32.totalorder %s266_s24, %s266_s24 }
  0x20   :  { %p380_p0 = scmp.ne.s32.totalorder %s266_s24, %s379_s4  ;;  %p385_p2 = scmp.lt.s32.totalorder %s379_s4, %s379_s4 }
  0x21   :  { %340 = vmatpush1.bf16.msra.mxu0 %v339_v16 }
  0x22   :  { %364 = vmatpush3.bf16.msra.mxu1 %v363_v22  ;;  %p386_p3 = por %p385_p2, %p384_p1 }
  0x23   :  { %366 = vmatprep.subr.bf16.mxu1 %v365_v24 }
  0x24   :  { %131 = vmatmul.mubr.f32.vlgmr.msra.gmra.mrb[0].mxu0 %v21_v23  ;;  %p387_p4 = pnand %p386_p3, %p380_p0 }
  0x26   :  { %368 = vmatpush3.bf16.msra.mxu1 %v367_v27 }
  0x27   :  { %370 = vmatprep.subr.bf16.mxu1 %v369_v30 }
  0x2a   :  { %372 = vmatpush3.bf16.msra.mxu1 %v371_v33 }
  0xf7   :  { %v132_v41 = vpop.f32.mrb[0].mxu0 }
  0xf8   :  { %v134_v42 = vpop.f32.mrb[1].mxu0  ;;  %v133_v44 = vadd.f32 %v132_v41, %v59_v40 }
  0xf9   :  { %v135_v43 = vadd.f32 %v134_v42, %v63_v39 }
  0xfb   :  { %240 = vmatprep.mubr.f32.mxu1 %v135_v43 }
  0xfc   :  { %241 = vmatmul.mubr.f32.vlgmr.msra.gmra.mrb[0].mxu1 %v133_v44 }
 0x1cf   :  { %v306_v45 = vpop.f32.mrb[0].mxu1 }
 0x1d0   :  { %v307_v46 = vpop.f32.mrb[1].mxu1 }
 0x1d1   :  { %v308_v48 = vadd.f32 %v307_v46, %v306_v45 }
 0x1d3   :  { %v243_v49 = vadd.f32 %v308_v48, %v273_v47 }
 0x1d5   :  { %v247_v50 = vsel %vm246_vm0, %v243_v49, -inf }
 0x1d6   :  { %248 = vmax.xlane.f32.xlu0 %v247_v50 }
 0x263   :  { %v249_v51 = vpop.xlane.xlu0 %248 }
 0x264   :  { %v250_v52 = vsub.f32 %v243_v49, %v249_v51 }
 0x266   :  { %v251_v53 = vmul.f32 1.442695, %v250_v52 }
 0x268   :  { %375 = vpow2.f32 %v251_v53 }
 0x272   :  { %v376_v54 = vpop.eup %375 }
 0x273   :  { %v253_v55 = vsel %vm246_vm0, %v376_v54, 0.0 }
 0x274   :  { %254 = vadd.xlane.f32.xlu0 %v253_v55 }
 0x301   :  { %v255_v56 = vpop.xlane.xlu0 %254 }
 0x302   :  { %377 = vrcp.f32 %v255_v56 }
 0x30c   :  { %v378_v57 = vpop.eup %377 }
 0x30d   :  { %v257_v58 = vmul.f32 %v378_v57, %v376_v54 }
 0x30f   :  { %258 = vst [vmem:[#allocation2] sm:$0x3] %v257_v58 }
 0x310   :  { %390 = shalt.err (!%p387_p4)
}
 0x311   :  { %s391_s27 = scalar_lea.hbm %s653_s5, 32 }
 0x312   :  { %p392_p5 = scmp.ne.s32.totalorder %s653_s5, %s391_s27  ;;  %p395_p6 = scmp.lt.u32.totalorder %s391_s27, %s653_s5 }
 0x314   :  { %p397_p7 = pnand %p395_p6, %p392_p5 }
 0x316   :  { %400 = shalt.err (!%p397_p7)
}
 0x317   :  { %268 = dma.vmem_to_hbm [thread:$0]  %s266_s24, 32, %s653_s5, [#allocation3]  }
 0x318   :  { %401 = dma.done.wait [#allocation3], 32  }
 0x319   :  { %402 = vsyncadd [#allocation3], 4294967264 }
 0x31a   :  { %272 = vsyncpa [#allocation3], 1 }

// kernel: cla_network_forward.2
= control target key start
LH: loop header
LB: loop body
LE: loop exit
PB: predicated region body
PF: predicated region fallthrough
CT: control target
= control target key end

     0   :  { %s786_s12 = smov 0   ;;  %s788_s13 = smov 0   ;;  %s884_s0 = inlined_call_operand.vmem [shape: bf16[2,64,256], index: 0, kind: input, shape index: {}]   ;;  %s885_s1 = inlined_call_operand.vmem [shape: bf16[256,128], index: 1, kind: input, shape index: {}]   ;;  %s886_s2 = inlined_call_operand.vmem [shape: f32[1,128], index: 2, kind: input, shape index: {}]   ;;  %s887_s3 = inlined_call_operand.vmem [shape: f32[2,1,128], index: 3, kind: output, shape index: {}]  }
   0x1   :  { %s790_s14 = smov 0  }
   0x2 LB: > { %s25_s15 = sadd.s32 1, %s759_s13  ;;  %p601_p0 = scmp.ge.s32.totalorder %s763_s14, 1  ;;  %s763_s14 = sphi %s790_s14, %s13_s14   ;;  %s759_s13 = sphi %s788_s13, %s889_s13   ;;  %s755_s12 = sphi %s786_s12, %s888_s12  }
   0x3   : > { %p27_p1 = scmp.ge.s32.totalorder %s25_s15, 2  ;;  %p157_p2 = scmp.lt.s32.totalorder %s763_s14, 3 }
   0x5   : > { %s891_s15 = smov (%p27_p1, %s25_s15), 0  ;;  %p158_p3 = pnand %p601_p0, %p157_p2 }
   0x6   : > { %v713_v0 = vld [vmem:[%s885_s1 + $0x40] sm:$0xff] (!%p158_p3)   ;;  %v715_v2 = vld [vmem:[%s885_s1 + $0x48] sm:$0xff] (!%p158_p3)   ;;  %p185_p4 = scmp.lt.s32.totalorder (!%p158_p3), %s755_s12, 1  ;;  %v717_v4 = vld [vmem:[%s885_s1 + $0x50] sm:$0xff] (!%p158_p3)   ;;  %v765_v24 = vmov (!%p158_p3), 0.0  }
   0x7   : > { %161 = sbr.rel (%p158_p3) target bundleno = 303 (0x12f), region = 32  ;;  %v714_v1 = vld [vmem:[%s885_s1] sm:$0xff] (!%p158_p3)   ;;  %632 = vmatprep.subr.bf16.mxu0 (!%p158_p3), %v713_v0  ;;  %672 = vmatprep.subr.bf16.mxu1 (!%p158_p3), %v713_v0  ;;  %v716_v3 = vld [vmem:[%s885_s1 + $0x8] sm:$0xff] (!%p158_p3)   ;;  %v718_v5 = vld [vmem:[%s885_s1 + $0x10] sm:$0xff] (!%p158_p3)   ;;  %203 = vst [vmem:[#allocation2] sm:$0x1] (!%p158_p3), %v765_v24 }
   0x8   : > { %633 = vmatpush3.bf16.msra.mxu0 (!%p158_p3), %v714_v1  ;;  %680 = vmatpush3.bf16.msra.mxu1 (!%p158_p3), %v714_v1  ;;  %v719_v6 = vld [vmem:[%s885_s1 + $0x58] sm:$0xff] (!%p158_p3)   ;;  %v721_v8 = vld [vmem:[%s885_s1 + $0x60] sm:$0xff] (!%p158_p3)   ;;  %v723_v10 = vld [vmem:[%s885_s1 + $0x68] sm:$0xff] (!%p158_p3)  }
   0x9   : > { %634 = vmatprep.subr.bf16.mxu0 (!%p158_p3), %v715_v2  ;;  %673 = vmatprep.subr.bf16.mxu1 (!%p158_p3), %v715_v2  ;;  %v720_v7 = vld [vmem:[%s885_s1 + $0x18] sm:$0xff] (!%p158_p3)   ;;  %v722_v9 = vld [vmem:[%s885_s1 + $0x20] sm:$0xff] (!%p158_p3)   ;;  %v724_v13 = vld [vmem:[%s885_s1 + $0x28] sm:$0xff] (!%p158_p3)  }
   0xa   : > { %v725_v14 = vld [vmem:[%s885_s1 + $0x70] sm:$0xff] (!%p158_p3)   ;;  %v727_v16 = vld [vmem:[%s885_s1 + $0x78] sm:$0xff] (!%p158_p3)   ;;  %v604_v27 = vld [vmem:[%s886_s2] ss:$0 sm:$0xff] (!%p158_p3) }
   0xb   : > { %v726_v15 = vld [vmem:[%s885_s1 + $0x30] sm:$0xff] (!%p158_p3)   ;;  %v728_v17 = vld [vmem:[%s885_s1 + $0x38] sm:$0xff] (!%p158_p3)  }
   0xc   : > { %635 = vmatpush3.bf16.msra.mxu0 (!%p158_p3), %v716_v3  ;;  %681 = vmatpush3.bf16.msra.mxu1 (!%p158_p3), %v716_v3 }
   0xd   : > { %636 = vmatprep.subr.bf16.mxu0 (!%p158_p3), %v717_v4  ;;  %674 = vmatprep.subr.bf16.mxu1 (!%p158_p3), %v717_v4 }
   0xe   : > { %s893_s12 = smov (!%p185_p4, %s755_s12), 1 }
   0xf   : > { %s631_s5 = sshll.u32 %s893_s12, 6  ;;  %s197_s6 = scalar_lea.vmem %s887_s3, %s893_s12 }
  0x10   : > { %637 = vmatpush3.bf16.msra.mxu0 %v718_v5  ;;  %682 = vmatpush3.bf16.msra.mxu1 %v718_v5  ;;  %s837_s10 = scalar_lea.vmem %s884_s0, %s631_s5 }
  0x11   : > { %638 = vmatprep.subr.bf16.mxu0 %v719_v6  ;;  %675 = vmatprep.subr.bf16.mxu1 %v719_v6  ;;  %v731_v11 = vld [vmem:[%s837_s10 + $0x4] ss:$8 sps:$4 sm:$0xff]   ;;  %v729_v18 = vld [vmem:[%s837_s10] ss:$8 sps:$4 sm:$0xff]   ;;  %v735_v20 = vld [vmem:[%s837_s10 + $0x14] ss:$8 sps:$4 sm:$0xff]  }
  0x12   : > { %v734_v12 = vld [vmem:[%s837_s10 + $0x24] ss:$8 sps:$4 sm:$0xff]   ;;  %419 = vmatprep.mubr.bf16.mxu0 %v731_v11  ;;  %v732_v19 = vld [vmem:[%s837_s10 + $0x20] ss:$8 sps:$4 sm:$0xff]   ;;  %v738_v21 = vld [vmem:[%s837_s10 + $0x34] ss:$8 sps:$4 sm:$0xff]  }
  0x13   : > { %435 = vmatprep.mubr.bf16.mxu1 %v734_v12  ;;  %v737_v22 = vld [vmem:[%s837_s10 + $0x10] ss:$8 sps:$4 sm:$0xff]  }
  0x14   : > { %639 = vmatpush3.bf16.msra.mxu0 %v720_v7  ;;  %683 = vmatpush3.bf16.msra.mxu1 %v720_v7  ;;  %v740_v23 = vld [vmem:[%s837_s10 + $0x30] ss:$8 sps:$4 sm:$0xff]  }
  0x15   : > { %640 = vmatprep.subr.bf16.mxu0 %v721_v8  ;;  %676 = vmatprep.subr.bf16.mxu1 %v721_v8 }
  0x18   : > { %641 = vmatpush3.bf16.msra.mxu0 %v722_v9  ;;  %684 = vmatpush3.bf16.msra.mxu1 %v722_v9 }
  0x19   : > { %642 = vmatprep.subr.bf16.mxu0 %v723_v10  ;;  %677 = vmatprep.subr.bf16.mxu1 %v723_v10 }
  0x1c   : > { %643 = vmatpush3.bf16.msra.mxu0 %v724_v13  ;;  %685 = vmatpush3.bf16.msra.mxu1 %v724_v13 }
  0x1d   : > { %644 = vmatprep.subr.bf16.mxu0 %v725_v14  ;;  %678 = vmatprep.subr.bf16.mxu1 %v725_v14  ;;  %v511_v14 = vld [vmem:[#allocation2] sm:$0x1] }
  0x20   : > { %645 = vmatpush3.bf16.msra.mxu0 %v726_v15  ;;  %686 = vmatpush3.bf16.msra.mxu1 %v726_v15 }
  0x21   : > { %646 = vmatprep.subr.bf16.mxu0 %v727_v16  ;;  %679 = vmatprep.subr.bf16.mxu1 %v727_v16 }
  0x24   : > { %647 = vmatpush3.bf16.msra.mxu0 %v728_v17  ;;  %687 = vmatpush3.bf16.msra.mxu1 %v728_v17 }
  0x27   : > { %420 = vmatmul.mubr.bf16.vlgmr.msra.gmra.mrb[0].mxu0 %v729_v18  ;;  %436 = vmatmul.mubr.bf16.vlgmr.msra.gmra.mrb[0].mxu1 %v732_v19 }
  0x28   : > { %427 = vmatprep.mubr.bf16.mxu0 %v735_v20  ;;  %443 = vmatprep.mubr.bf16.mxu1 %v738_v21 }
  0x2f   : > { %428 = vmatmul.mubr.bf16.gmra.mrb[4].mxu0 %v737_v22  ;;  %444 = vmatmul.mubr.bf16.gmra.mrb[4].mxu1 %v740_v23 }
  0xfa   : > { %v648_v25 = vpop.f32.mrb[0].mxu0  ;;  %v660_v26 = vpop.f32.mrb[0].mxu1 }
  0xfb   : > { %v649_v28 = vpop.f32.mrb[1].mxu0  ;;  %v661_v29 = vpop.f32.mrb[1].mxu1 }
  0xfc   : > { %v650_v30 = vadd.f32 %v649_v28, %v648_v25  ;;  %v651_v31 = vpop.f32.mrb[2].mxu0  ;;  %v662_v32 = vadd.f32 %v661_v29, %v660_v26  ;;  %v663_v33 = vpop.f32.mrb[2].mxu1 }
  0xfd   : > { %v652_v34 = vpop.f32.mrb[3].mxu0  ;;  %v664_v35 = vpop.f32.mrb[3].mxu1 }
  0xfe   : > { %v422_v36 = vadd.f32 %v650_v30, %v604_v27  ;;  %v653_v37 = vadd.f32 %v652_v34, %v651_v31  ;;  %v665_v38 = vadd.f32 %v664_v35, %v663_v33  ;;  %v438_v56 = vadd.f32 %v662_v32, %v604_v27 }
 0x100   : > { %v425_v39 = vadd.f32 %v653_v37, %v604_v27  ;;  %v452_v40 = vmax.f32 %v422_v36, 0.0  ;;  %v441_v59 = vadd.f32 %v665_v38, %v604_v27  ;;  %v456_v63 = vmax.f32 %v438_v56, 0.0 }
 0x102   : > { %v453_v41 = vmax.f32 %v425_v39, 0.0  ;;  %v654_v42 = vpop.f32.mrb[4].mxu0  ;;  %v666_v43 = vpop.f32.mrb[4].mxu1  ;;  %v457_v1 = vmax.f32 %v441_v59, 0.0 }
 0x103   : > { %v655_v44 = vpop.f32.mrb[5].mxu0  ;;  %v667_v45 = vpop.f32.mrb[5].mxu1 }
 0x104   : > { %v512_v46 = vadd.f32 %v453_v41, %v452_v40  ;;  %v656_v47 = vadd.f32 %v655_v44, %v654_v42  ;;  %v657_v48 = vpop.f32.mrb[6].mxu0  ;;  %v668_v49 = vadd.f32 %v667_v45, %v666_v43  ;;  %v669_v50 = vpop.f32.mrb[6].mxu1 }
 0x105   : > { %v658_v51 = vpop.f32.mrb[7].mxu0  ;;  %v670_v52 = vpop.f32.mrb[7].mxu1 }
 0x106   : > { %v430_v53 = vadd.f32 %v656_v47, %v604_v27  ;;  %v659_v54 = vadd.f32 %v658_v51, %v657_v48  ;;  %v671_v55 = vadd.f32 %v670_v52, %v669_v50  ;;  %v446_v62 = vadd.f32 %v668_v49, %v604_v27 }
 0x108   : > { %v454_v57 = vmax.f32 %v430_v53, 0.0  ;;  %v433_v58 = vadd.f32 %v659_v54, %v604_v27  ;;  %v458_v3 = vmax.f32 %v446_v62, 0.0  ;;  %v449_v4 = vadd.f32 %v671_v55, %v604_v27 }
 0x10a   : > { %v513_v60 = vadd.f32 %v512_v46, %v454_v57  ;;  %v455_v61 = vmax.f32 %v433_v58, 0.0  ;;  %v459_v7 = vmax.f32 %v449_v4, 0.0 }
 0x10c   : > { %v514_v0 = vadd.f32 %v513_v60, %v455_v61 }
 0x10e   : > { %v515_v2 = vadd.f32 %v514_v0, %v456_v63 }
 0x110   : > { %v516_v5 = vadd.f32 %v515_v2, %v457_v1 }
 0x112   : > { %v517_v6 = vadd.f32 %v516_v5, %v458_v3 }
 0x114   : > { %v518_v8 = vadd.f32 %v517_v6, %v459_v7 }
 0x116   : > { %v519_v9 = vrot.slane %v518_v8, 4 }
 0x118   : > { %v520_v10 = vadd.f32 %v519_v9, %v518_v8 }
 0x11a   : > { %v521_v11 = vrot.slane %v520_v10, 2 }
 0x11c   : > { %v522_v12 = vadd.f32 %v521_v11, %v520_v10 }
 0x11e   : > { %v523_v13 = vrot.slane %v522_v12, 1 }
 0x120   : > { %v524_v15 = vadd.f32 %v523_v13, %v522_v12 }
 0x122   : > { %v525_v16 = vadd.f32 %v524_v15, %v511_v14 }
 0x124   : > { %526 = vst [vmem:[#allocation2] sm:$0x1] %v525_v16 }
 0x12b   : > { %v530_v17 = vld [vmem:[#allocation2] sm:$0x1] }
 0x12c   : > { %v531_v18 = vmul.f32 0.015625, %v530_v17 }
 0x12e   : > { %532 = vst [vmem:[%s197_s6] sm:$0x1] %v531_v18 }
 0x12f PF: > { %s13_s14 = sadd.s32 1, %s763_s14   ;;  %s888_s12 = smov %s759_s13 }
 0x130   : > { %p10_p5 = scmp.ge.s32.totalorder %s13_s14, 4   ;;  %s889_s13 = smov %s891_s15 }
 0x132   :  { %12 = sbr.rel (!%p10_p5) target bundleno = 2 (0x2), region = 70 }

</bundles_post_ra>
